<compile_context>
chip_gen: v6e
topology: v6e:2x2x1
jax: 0.10.0
libtpu: 0.0.40
codegen_flags: <defaults>
</compile_context>

<pallas_src>
import math
from functools import partial

import jax
import jax.numpy as jnp
from jax import lax
from jax.experimental import pallas as pl
from jax.experimental.pallas import tpu as pltpu


# --------------------------- Hardware-derived knobs --------------------------
_VMEM_LIMIT_CACHE = None


def _vmem_limit_bytes():
    """Scoped-VMEM cap: leave headroom on v7x (64 MiB physical per TC)."""
    global _VMEM_LIMIT_CACHE
    if _VMEM_LIMIT_CACHE is None:
        try:
            cap = pltpu.get_tpu_info().vmem_capacity_bytes
        except Exception:
            cap = 128 * 1024 * 1024
        if cap <= 64 * 1024 * 1024:          # v7x
            _VMEM_LIMIT_CACHE = 48 * 1024 * 1024
        else:                                 # v5e / v6e (128 MiB physical)
            _VMEM_LIMIT_CACHE = 64 * 1024 * 1024
    return _VMEM_LIMIT_CACHE


def _mxu_lane_target():
    """Preferred head-group lane width: 256 on v6e/v7x (256-wide MXU), 128 on v5e."""
    try:
        kind = jax.devices()[0].device_kind.lower()
    except Exception:
        kind = ""
    return 128 if "v5" in kind else 256


# ------------------------- Linear projection kernel -------------------------
# y = x @ W + b  (PyTorch nn.Linear with W pre-transposed to (in, out))
def _linear_kernel(x_ref, w_ref, b_ref, o_ref):
    # bf16 MXU operands, f32 accumulation (weights are pre-cast to bf16 outside).
    x = x_ref[...].astype(w_ref.dtype)
    acc = jnp.dot(x, w_ref[...], preferred_element_type=jnp.float32)
    o_ref[...] = (acc + b_ref[...].astype(jnp.float32)).astype(o_ref.dtype)


def _linear_call(x2d, w, b2, out_dtype, tm, buffered_weights, vmem_limit):
    M, K = x2d.shape
    N = w.shape[1]
    wb_kwargs = {}
    if buffered_weights:
        # Weight/bias index_map is constant across the grid: a single buffer
        # suffices, freeing VMEM for larger row tiles.
        wb_kwargs = dict(pipeline_mode=pl.Buffered(buffer_count=1))
    in_specs = [
        pl.BlockSpec((tm, K), lambda i: (i, 0)),
        pl.BlockSpec((K, N), lambda i: (0, 0), **wb_kwargs),
        pl.BlockSpec((1, N), lambda i: (0, 0), **wb_kwargs),
    ]
    out_specs = pl.BlockSpec((tm, N), lambda i: (i, 0))
    return pl.pallas_call(
        _linear_kernel,
        out_shape=jax.ShapeDtypeStruct((M, N), out_dtype),
        grid=(pl.cdiv(M, tm),),
        in_specs=in_specs,
        out_specs=out_specs,
        compiler_params=pltpu.CompilerParams(
            dimension_semantics=("parallel",),
            vmem_limit_bytes=vmem_limit,
        ),
    )(x2d, w, b2)


def linear(x2d, w, b, out_dtype=None, row_tile=512):
    """y = x2d @ w + b, tiled and pipelined over the row (M) axis."""
    M, K = x2d.shape
    N = w.shape[1]
    out_dtype = x2d.dtype if out_dtype is None else out_dtype
    # Fixed row tile + cdiv grid (ragged tail handled by Pallas masking); never
    # fall back to a single whole-M tile.
    tm = M if M <= row_tile else row_tile
    b2 = b.reshape(1, N)
    vmem_limit = _vmem_limit_bytes()
    try:
        return _linear_call(x2d, w, b2, out_dtype, tm, True, vmem_limit)
    except Exception:
        # TODO(synk): pipeline_mode=pl.Buffered(1) unsupported on this jax
        # version; fall back to default double-buffering of the resident weight.
        return _linear_call(x2d, w, b2, out_dtype, tm, False, vmem_limit)


# ---------------------------- Attention kernel ------------------------------
# One grid step = one (batch, head-group, q-tile) triple. Processes
# heads_per_blk heads so tile last dims are lane-dense. Produces the context
# tile (already in (tq, heads_per_blk*head_dim) layout) and the scaled + masked
# pre-softmax attention scores, matching the PyTorch module's return values.
def _attention_kernel(*refs, scale, heads_per_blk, head_dim, has_mask):
    if has_mask:
        q_ref, k_ref, v_ref, m_ref, ctx_ref, sc_ref = refs
    else:
        q_ref, k_ref, v_ref, ctx_ref, sc_ref = refs
        m_ref = None

    q = q_ref[...]                      # (tq,  heads_per_blk * head_dim) bf16
    k = k_ref[...]                      # (Skv, heads_per_blk * head_dim) bf16
    v = v_ref[...]                      # (Skv, heads_per_blk * head_dim) bf16

    if has_mask:
        # Hoisted out of the per-head loop (JAX does not CSE broadcast_in_dim).
        m_b = jnp.broadcast_to(m_ref[...].astype(jnp.float32),
                               (q.shape[0], k.shape[0]))

    direct_store = (head_dim % 128) == 0
    ctx_parts = []
    for h in range(heads_per_blk):
        lo, hi = h * head_dim, (h + 1) * head_dim
        q_h, k_h, v_h = q[:, lo:hi], k[:, lo:hi], v[:, lo:hi]

        # Q . K^T contracting the last axis of both operands (no k.T copy),
        # bf16 operands with f32 accumulation.
        scores = lax.dot_general(
            q_h, k_h, (((1,), (1,)), ((), ())),
            preferred_element_type=jnp.float32,
        ) * scale
        if has_mask:
            scores = scores + m_b
        sc_ref[h] = scores.astype(sc_ref.dtype)   # masked, pre-softmax scores

        # softmax over the key axis (f32 statistics, EUP reciprocal)
        smax = jnp.max(scores, axis=-1, keepdims=True)
        p = jnp.exp(scores - smax)
        p = p * pl.reciprocal(jnp.sum(p, axis=-1, keepdims=True), approx=True)
        # TODO(synk): attention_probs dropout is identity at inference; not applied.

        ctx_h = jnp.dot(p.astype(v.dtype), v_h,
                        preferred_element_type=jnp.float32)
        if direct_store:
            # 128-lane aligned slice: unmasked store, no relayout.
            ctx_ref[:, lo:hi] = ctx_h.astype(ctx_ref.dtype)
        else:
            ctx_parts.append(ctx_h)

    if not direct_store:
        # Single lane-dense store of all heads in this block.
        ctx_ref[...] = jnp.concatenate(ctx_parts, axis=-1).astype(ctx_ref.dtype)


def _heads_per_block(num_heads, head_dim, target_lanes):
    """Largest head group whose lane width is a multiple of 128 and <= target."""
    best = None
    cap = max(target_lanes, 128)
    for hpb in range(1, num_heads + 1):
        if num_heads % hpb:
            continue
        w = hpb * head_dim
        if w % 128 == 0 and w <= cap:
            best = hpb
    if best is not None:
        return best
    # Fallback: smallest lane-aligned group, else all heads.
    for hpb in range(1, num_heads + 1):
        if num_heads % hpb == 0 and (hpb * head_dim) % 128 == 0:
            return hpb
    return num_heads


def _pick_q_tile(Sq, Skv, blk, hpb, in_itemsize, vmem_limit):
    """Largest Sq tile whose per-step working set stays within ~60% of VMEM."""
    budget = int(vmem_limit * 0.6)

    def est(t):
        kv = 2 * (Skv * blk * in_itemsize) * 2              # K + V (double-buffered)
        qc = (t * blk * in_itemsize + t * blk * 4) * 2      # Q in + ctx out
        sc = hpb * t * Skv * 4 * 2                          # raw-scores output tile
        tmp = 4 * t * Skv * 4                               # f32 intermediates
        return kv + qc + sc + tmp

    tq = min(Sq, 512)
    while tq > 8 and est(tq) > budget:
        tq //= 2
    if tq >= Sq:
        return Sq
    return max(8, (tq // 8) * 8)


# ------------------------------- Module glue --------------------------------
def prepare_params(params, compute_dtype=jnp.bfloat16):
    """One-time parameter prep: fuse K/V weights and pre-cast to the MXU dtype."""
    wkv = jnp.concatenate([params["wk"], params["wv"]], axis=1)   # (Cd, 2*Hd)
    bkv = jnp.concatenate([params["bk"], params["bv"]], axis=0)   # (2*Hd,)
    return {
        "wq": params["wq"].astype(compute_dtype),
        "bq": params["bq"].astype(jnp.float32),
        "wkv": wkv.astype(compute_dtype),
        "bkv": bkv.astype(jnp.float32),
    }


def bert_out_attention(hidden_states, context, fused_params, num_heads,
                       attention_mask=None, scores_dtype=None):
    B, Sq, Hd = hidden_states.shape
    Bc, Skv, Cd = context.shape
    assert Bc == B and Hd % num_heads == 0
    D = Hd // num_heads
    dtype = hidden_states.dtype
    scores_dtype = dtype if scores_dtype is None else scores_dtype
    vmem_limit = _vmem_limit_bytes()

    # Q projection; K and V fused into one matmul. Projection intermediates are
    # kept in bf16 (MXU-native, halves intermediate HBM traffic).
    proj_dtype = fused_params["wq"].dtype
    q = linear(hidden_states.reshape(B * Sq, Hd),
               fused_params["wq"], fused_params["bq"], out_dtype=proj_dtype)
    kv = linear(context.reshape(B * Skv, Cd),
                fused_params["wkv"], fused_params["bkv"], out_dtype=proj_dtype)

    q3 = q.reshape(B, Sq, Hd)
    kv3 = kv.reshape(B, Skv, 2 * Hd)

    hpb = _heads_per_block(num_heads, D, _mxu_lane_target())  # heads per grid step
    nhb = num_heads // hpb                                    # head blocks
    blk = hpb * D                                             # lane width of tiles

    tq = _pick_q_tile(Sq, Skv, blk, hpb, jnp.dtype(proj_dtype).itemsize, vmem_limit)
    nq = pl.cdiv(Sq, tq)

    # Q / ctx head-group views come straight out of the (B, S, H) layout — no
    # transpose_for_scores round trip through HBM. Sq is tiled (second grid axis).
    q_spec = pl.BlockSpec((None, tq, blk), lambda bh, qi: (bh // nhb, qi, bh % nhb))
    if blk % 128 == 0:
        # Slice K / V head groups directly out of the fused projection output.
        k_in, v_in = kv3, kv3
        k_spec = pl.BlockSpec((None, Skv, blk),
                              lambda bh, qi: (bh // nhb, 0, bh % nhb))
        v_spec = pl.BlockSpec((None, Skv, blk),
                              lambda bh, qi: (bh // nhb, 0, nhb + bh % nhb))
    else:
        # Tiny configs (blk not lane-aligned and != 2*Hd): split once in HBM.
        k_in, v_in = kv3[:, :, :Hd], kv3[:, :, Hd:]
        k_spec = pl.BlockSpec((None, Skv, blk),
                              lambda bh, qi: (bh // nhb, 0, bh % nhb))
        v_spec = pl.BlockSpec((None, Skv, blk),
                              lambda bh, qi: (bh // nhb, 0, bh % nhb))

    in_specs = [q_spec, k_spec, v_spec]
    inputs = [q3, k_in, v_in]

    has_mask = attention_mask is not None
    if has_mask:
        # Standard BERT extended mask (B, 1, 1|Sq, Skv); broadcast in-kernel.
        assert attention_mask.ndim == 4 and attention_mask.shape[1] == 1
        mq = attention_mask.shape[2]
        mask3 = attention_mask.reshape(B, mq, Skv)
        if mq == 1:
            m_spec = pl.BlockSpec((None, 1, Skv), lambda bh, qi: (bh // nhb, 0, 0))
        else:
            assert mq == Sq
            m_spec = pl.BlockSpec((None, tq, Skv), lambda bh, qi: (bh // nhb, qi, 0))
        in_specs.append(m_spec)
        inputs.append(mask3)

    out_specs = (
        pl.BlockSpec((None, tq, blk), lambda bh, qi: (bh // nhb, qi, bh % nhb)),
        pl.BlockSpec((None, hpb, tq, Skv),
                     lambda bh, qi: (bh // nhb, bh % nhb, qi, 0)),
    )

    # TODO(synk): if raw scores were not required by the caller, the key axis
    # could be flash-tiled (and the scores writeback dropped) to cap VMEM and
    # HBM traffic independent of Skv.
    ctx, scores = pl.pallas_call(
        partial(
            _attention_kernel,
            scale=1.0 / math.sqrt(D),
            heads_per_blk=hpb,
            head_dim=D,
            has_mask=has_mask,
        ),
        out_shape=(
            jax.ShapeDtypeStruct((B, Sq, Hd), dtype),                    # context_layer
            jax.ShapeDtypeStruct((B, num_heads, Sq, Skv), scores_dtype), # attention_scores
        ),
        # Flat (batch*head-block) axis x Sq tiles: both parallel, so v7x's two
        # TensorCores and v5e/v6e megacore can shard the work.
        grid=(B * nhb, nq),
        in_specs=in_specs,
        out_specs=out_specs,
        compiler_params=pltpu.CompilerParams(
            dimension_semantics=("parallel", "parallel"),
            vmem_limit_bytes=vmem_limit,
        ),
    )(*inputs)

    # ctx is already (B, Sq, all_head_size) — no output transpose needed.
    return ctx, scores


# ----------------------------------- Main ------------------------------------
if __name__ == "__main__":
    # Small config consistent with the module (head_dim=32, 4 heads).
    B, Sq, Skv = 2, 8, 8
    hidden_size = 128
    ctx_dim = 128
    num_heads = 4

    key = jax.random.PRNGKey(0)
    ks = jax.random.split(key, 9)

    params = {
        "wq": 0.02 * jax.random.normal(ks[0], (hidden_size, hidden_size), jnp.float32),
        "bq": 0.02 * jax.random.normal(ks[1], (hidden_size,), jnp.float32),
        "wk": 0.02 * jax.random.normal(ks[2], (ctx_dim, hidden_size), jnp.float32),
        "bk": 0.02 * jax.random.normal(ks[3], (hidden_size,), jnp.float32),
        "wv": 0.02 * jax.random.normal(ks[4], (ctx_dim, hidden_size), jnp.float32),
        "bv": 0.02 * jax.random.normal(ks[5], (hidden_size,), jnp.float32),
    }

    hidden_states = jax.random.normal(ks[6], (B, Sq, hidden_size), jnp.float32)
    context = jax.random.normal(ks[7], (B, Skv, ctx_dim), jnp.float32)

    # Additive attention mask (BERT-style extended mask): 0 = attend, -1e4 = masked.
    mask_bits = (jax.random.uniform(ks[8], (B, 1, 1, Skv)) > 0.2).astype(jnp.float32)
    attention_mask = (1.0 - mask_bits) * -10000.0

    # One-time parameter prep (fused KV weight, bf16 MXU weights).
    fused_params = prepare_params(params)

    context_layer, attention_scores = bert_out_attention(
        hidden_states, context, fused_params, num_heads, attention_mask
    )
    jax.block_until_ready((context_layer, attention_scores))

    assert context_layer.shape == (B, Sq, hidden_size)
    assert attention_scores.shape == (B, num_heads, Sq, Skv)

    # Pure-JAX f32 reference (same math as the PyTorch module) for a sanity check.
    head_dim = hidden_size // num_heads

    def ref_forward(hs, cx, p, mask):
        qr = hs @ p["wq"] + p["bq"]
        kr = cx @ p["wk"] + p["bk"]
        vr = cx @ p["wv"] + p["bv"]

        def split(x, S):
            return x.reshape(B, S, num_heads, head_dim).transpose(0, 2, 1, 3)

        qh, kh, vh = split(qr, Sq), split(kr, Skv), split(vr, Skv)
        sc = jnp.einsum("bhqd,bhkd->bhqk", qh, kh) / math.sqrt(head_dim)
        sc = sc + mask
        pr = jax.nn.softmax(sc, axis=-1)
        cl = jnp.einsum("bhqk,bhkd->bhqd", pr, vh)
        cl = cl.transpose(0, 2, 1, 3).reshape(B, Sq, hidden_size)
        return cl, sc

    ref_ctx, ref_sc = ref_forward(hidden_states, context, params, attention_mask)
    # Tolerances account for the bf16-MXU / approx-reciprocal fast path.
    assert jnp.allclose(context_layer, ref_ctx, rtol=2e-2, atol=2e-2), "context mismatch"
    assert jnp.allclose(attention_scores, ref_sc, rtol=2e-2, atol=2e-2), "scores mismatch"

    print("KERNEL_OK")
</pallas_src>

<mosaic_0001>
module attributes {stable_mosaic.version = 11 : i64} {
  func.func @_linear_kernel(%arg0: i32, %arg1: memref<16x128xf32, #tpu.memory_space<vmem>>, %arg2: memref<128x128xbf16, #tpu.memory_space<vmem>>, %arg3: memref<1x128xf32, #tpu.memory_space<vmem>>, %arg4: memref<16x128xbf16, #tpu.memory_space<vmem>>) attributes {dimension_semantics = [#tpu.dimension_semantics<parallel>], iteration_bounds = array<i64: 1>, scalar_prefetch = 0 : i64, scratch_operands = 0 : i64, tpu.core_type = #tpu.core_type<tc>, window_params = [{transform_indices = @transform_0, window_bounds = array<i64: 16, 128>}, {pipeline_mode = #tpu.pipeline_mode<synchronous>, transform_indices = @transform_1, window_bounds = array<i64: 128, 128>}, {pipeline_mode = #tpu.pipeline_mode<synchronous>, transform_indices = @transform_2, window_bounds = array<i64: 1, 128>}, {transform_indices = @transform_3, window_bounds = array<i64: 16, 128>}]} {
    %c0 = arith.constant 0 : index
    %c0_0 = arith.constant 0 : index
    %0 = vector.load %arg1[%c0, %c0_0] : memref<16x128xf32, #tpu.memory_space<vmem>>, vector<16x128xf32>
    %1 = arith.truncf %0 : vector<16x128xf32> to vector<16x128xbf16>
    %c0_1 = arith.constant 0 : index
    %c0_2 = arith.constant 0 : index
    %2 = vector.load %arg2[%c0_1, %c0_2] : memref<128x128xbf16, #tpu.memory_space<vmem>>, vector<128x128xbf16>
    %cst = arith.constant dense<0.000000e+00> : vector<16x128xf32>
    %3 = tpu.matmul %1, %2, %cst {dimension_numbers = #tpu.dot_dimension_numbers<[1], [0], [0], [1], [0, 0, 1, 1], [], []>} : vector<16x128xbf16>, vector<128x128xbf16>, vector<16x128xf32> -> vector<16x128xf32>
    %c0_3 = arith.constant 0 : index
    %c0_4 = arith.constant 0 : index
    %4 = vector.load %arg3[%c0_3, %c0_4] : memref<1x128xf32, #tpu.memory_space<vmem>>, vector<1x128xf32>
    %5 = vector.broadcast %4 : vector<1x128xf32> to vector<16x128xf32>
    %6 = arith.addf %3, %5 : vector<16x128xf32>
    %7 = arith.truncf %6 : vector<16x128xf32> to vector<16x128xbf16>
    %c0_5 = arith.constant 0 : index
    %c0_6 = arith.constant 0 : index
    %8 = vector.load %arg4[%c0_5, %c0_6] : memref<16x128xbf16, #tpu.memory_space<vmem>>, vector<16x128xbf16>
    tpu.vector_store %arg4[%c0_5, %c0_6], %7 {strides = array<i32>} : memref<16x128xbf16, #tpu.memory_space<vmem>>, vector<16x128xbf16>,
    return
  }
  func.func @transform_0(%arg0: i32) -> (i32, i32) {
    %c0_i32 = arith.constant 0 : i32
    %c0_i32_0 = arith.constant 0 : i32
    return %arg0, %c0_i32 : i32, i32
  }
  func.func @transform_1(%arg0: i32) -> (i32, i32) {
    %c0_i32 = arith.constant 0 : i32
    %c0_i32_0 = arith.constant 0 : i32
    %c0_i32_1 = arith.constant 0 : i32
    return %c0_i32, %c0_i32_0 : i32, i32
  }
  func.func @transform_2(%arg0: i32) -> (i32, i32) {
    %c0_i32 = arith.constant 0 : i32
    %c0_i32_0 = arith.constant 0 : i32
    %c0_i32_1 = arith.constant 0 : i32
    return %c0_i32, %c0_i32_0 : i32, i32
  }
  func.func @transform_3(%arg0: i32) -> (i32, i32) {
    %c0_i32 = arith.constant 0 : i32
    %c0_i32_0 = arith.constant 0 : i32
    return %arg0, %c0_i32 : i32, i32
  }
}

module attributes {stable_mosaic.version = 11 : i64} {
  func.func @_linear_kernel(%arg0: i32, %arg1: memref<16x128xf32, #tpu.memory_space<vmem>>, %arg2: memref<128x128xbf16, #tpu.memory_space<vmem>>, %arg3: memref<1x128xf32, #tpu.memory_space<vmem>>, %arg4: memref<16x128xbf16, #tpu.memory_space<vmem>>) attributes {dimension_semantics = [#tpu.dimension_semantics<parallel>], iteration_bounds = array<i64: 1>, scalar_prefetch = 0 : i64, scratch_operands = 0 : i64, tpu.core_type = #tpu.core_type<tc>, window_params = [{transform_indices = @transform_0, window_bounds = array<i64: 16, 128>}, {pipeline_mode = #tpu.pipeline_mode<synchronous>, transform_indices = @transform_1, window_bounds = array<i64: 128, 128>}, {pipeline_mode = #tpu.pipeline_mode<synchronous>, transform_indices = @transform_2, window_bounds = array<i64: 1, 128>}, {transform_indices = @transform_3, window_bounds = array<i64: 16, 128>}]} {
    %c0 = arith.constant 0 : index
    %c0_0 = arith.constant 0 : index
    %0 = vector.load %arg1[%c0, %c0_0] : memref<16x128xf32, #tpu.memory_space<vmem>>, vector<16x128xf32>
    %1 = arith.truncf %0 : vector<16x128xf32> to vector<16x128xbf16>
    %c0_1 = arith.constant 0 : index
    %c0_2 = arith.constant 0 : index
    %2 = vector.load %arg2[%c0_1, %c0_2] : memref<128x128xbf16, #tpu.memory_space<vmem>>, vector<128x128xbf16>
    %cst = arith.constant dense<0.000000e+00> : vector<16x128xf32>
    %3 = tpu.matmul %1, %2, %cst {dimension_numbers = #tpu.dot_dimension_numbers<[1], [0], [0], [1], [0, 0, 1, 1], [], []>} : vector<16x128xbf16>, vector<128x128xbf16>, vector<16x128xf32> -> vector<16x128xf32>
    %c0_3 = arith.constant 0 : index
    %c0_4 = arith.constant 0 : index
    %4 = vector.load %arg3[%c0_3, %c0_4] : memref<1x128xf32, #tpu.memory_space<vmem>>, vector<1x128xf32>
    %5 = vector.broadcast %4 : vector<1x128xf32> to vector<16x128xf32>
    %6 = arith.addf %3, %5 : vector<16x128xf32>
    %7 = arith.truncf %6 : vector<16x128xf32> to vector<16x128xbf16>
    %c0_5 = arith.constant 0 : index
    %c0_6 = arith.constant 0 : index
    %8 = vector.load %arg4[%c0_5, %c0_6] : memref<16x128xbf16, #tpu.memory_space<vmem>>, vector<16x128xbf16>
    tpu.vector_store %arg4[%c0_5, %c0_6], %7 {strides = array<i32>} : memref<16x128xbf16, #tpu.memory_space<vmem>>, vector<16x128xbf16>,
    return
  }
  func.func @transform_0(%arg0: i32) -> (i32, i32) {
    %c0_i32 = arith.constant 0 : i32
    %c0_i32_0 = arith.constant 0 : i32
    return %arg0, %c0_i32 : i32, i32
  }
  func.func @transform_1(%arg0: i32) -> (i32, i32) {
    %c0_i32 = arith.constant 0 : i32
    %c0_i32_0 = arith.constant 0 : i32
    %c0_i32_1 = arith.constant 0 : i32
    return %c0_i32, %c0_i32_0 : i32, i32
  }
  func.func @transform_2(%arg0: i32) -> (i32, i32) {
    %c0_i32 = arith.constant 0 : i32
    %c0_i32_0 = arith.constant 0 : i32
    %c0_i32_1 = arith.constant 0 : i32
    return %c0_i32, %c0_i32_0 : i32, i32
  }
  func.func @transform_3(%arg0: i32) -> (i32, i32) {
    %c0_i32 = arith.constant 0 : i32
    %c0_i32_0 = arith.constant 0 : i32
    return %arg0, %c0_i32 : i32, i32
  }
}

</mosaic_0001>

<bundles_post_ra>
// kernel: tpu_custom_call.1
= control target key start
LH: loop header
LB: loop body
LE: loop exit
PB: predicated region body
PF: predicated region fallthrough
CT: control target
= control target key end

     0   :  { %8 = vsyncpa [#allocation3], 0  ;;  %s364_s0 = inlined_call_operand.hbm [shape: f32[16,128], index: 0, kind: input, shape index: {}]   ;;  %s365_s1 = inlined_call_operand.hbm [shape: bf16[128,128], index: 1, kind: input, shape index: {}]   ;;  %s366_s2 = inlined_call_operand.vmem [shape: f32[1,128], index: 2, kind: input, shape index: {}]   ;;  %s367_s3 = inlined_call_operand.hbm [shape: bf16[16,128], index: 3, kind: output, shape index: {}]  }
   0x1   :  { %9 = vsyncpa [#allocation6], 0 }
   0x2   :  { %10 = vsyncpa [#allocation4], 0  ;;  %s317_s12 = smov [#allocation2]  }
   0x3   :  { %s16_s13 = sshll.u32 %s317_s12, 4  ;;  %s17_s13 = int_to_ptr.vmem [resolvable:$true] %s16_s13 }
   0x4   :  { %s259_s14 = scalar_lea.vmem %s17_s13, 256  ;;  %p264_p1 = scmp.lt.s32.totalorder %s17_s13, %s17_s13 }
   0x5   :  { %p260_p0 = scmp.ne.s32.totalorder %s17_s13, %s259_s14  ;;  %p265_p2 = scmp.lt.s32.totalorder %s259_s14, %s259_s14 }
   0x7   :  { %p266_p3 = por %p265_p2, %p264_p1 }
   0x9   :  { %p267_p4 = pnand %p266_p3, %p260_p0 }
   0xb   :  { %270 = shalt.err (!%p267_p4)
}
   0xc   :  { %s318_s15 = smov 128   ;;  %s319_s16 = smov 8  }
   0xd   :  { %22 = dma.hbm_to_vmem [thread:$0]  %s364_s0, 256, %s17_s13, [#allocation3], %s318_s15, %s318_s15, %s319_s16  }
   0xe   :  { %s320_s19 = smov [#allocation5]  }
   0xf   :  { %s28_s20 = sshll.u32 %s320_s19, 4  ;;  %s29_s20 = int_to_ptr.vmem [resolvable:$true] %s28_s20 }
  0x10   :  { %s279_s21 = scalar_lea.vmem %s29_s20, 1024  ;;  %p284_p6 = scmp.lt.s32.totalorder %s29_s20, %s29_s20 }
  0x11   :  { %p280_p5 = scmp.ne.s32.totalorder %s29_s20, %s279_s21  ;;  %p285_p7 = scmp.lt.s32.totalorder %s279_s21, %s279_s21 }
  0x13   :  { %p286_p8 = por %p285_p7, %p284_p6 }
  0x15   :  { %p287_p9 = pnand %p286_p8, %p280_p5 }
  0x17   :  { %290 = shalt.err (!%p287_p9)
}
  0x18   :  { %s321_s22 = smov 64   ;;  %s322_s23 = smov 4  }
  0x19   :  { %34 = dma.hbm_to_vmem [thread:$0]  %s365_s1, 1024, %s29_s20, [#allocation6], %s321_s22, %s321_s22, %s322_s23  }
  0x1a   :  { %311 = dma.done.wait [#allocation3], 256  }
  0x1b   :  { %312 = vsyncadd [#allocation3], 4294967040 }
  0x1c   :  { %313 = dma.done.wait [#allocation6], 1024  }
  0x1d   :  { %314 = vsyncadd [#allocation6], 4294966272  ;;  %v323_v0 = vmov 0.0   ;;  %vm324_vm0 = vmmov 0   ;;  %v243_v1 = vld [vmem:[#allocation5 + $0x38] sm:$0xff]   ;;  %v244_v2 = vld [vmem:[#allocation5 + $0x30] sm:$0xff]  }
  0x1e   :  { %214 = vmatprep.subr.bf16.mxu0 %v323_v0  ;;  %230 = vmatprep.mubr.msk.bf16.mxu0 %vm324_vm0, %v323_v0  ;;  %v245_v3 = vld [vmem:[#allocation5 + $0x28] sm:$0xff]   ;;  %v246_v4 = vld [vmem:[#allocation5 + $0x20] sm:$0xff]   ;;  %v247_v5 = vld [vmem:[#allocation5 + $0x18] sm:$0xff]   ;;  %s325_s26 = smov [#allocation7]  }
  0x1f   :  { %215 = vmatpush3.bf16.msra.mxu0 %v243_v1  ;;  %v248_v6 = vld [vmem:[#allocation5 + $0x10] sm:$0xff]   ;;  %v249_v7 = vld [vmem:[#allocation5 + $0x8] sm:$0xff]   ;;  %v250_v8 = vld [vmem:[#allocation5] sm:$0xff]   ;;  %s174_s27 = sshll.u32 %s325_s26, 4  ;;  %s175_s27 = int_to_ptr.vmem [resolvable:$true] %s174_s27 }
  0x20   :  { %216 = vmatprep.subr.bf16.mxu0 %v323_v0  ;;  %v44_v9 = vld [vmem:[#allocation2] sm:$0xff]  ;;  %v45_v10 = vld [vmem:[#allocation2 + $0x8] sm:$0xff]  ;;  %s291_s28 = scalar_lea.vmem %s175_s27, 128  ;;  %p296_p11 = scmp.lt.s32.totalorder %s175_s27, %s175_s27 }
  0x21   :  { %v46_v11 = vpack.c.bf16 %v45_v10, %v44_v9  ;;  %v187_v13 = vld [vmem:[%s366_s2] ss:$0 sm:$0xff]  ;;  %p292_p10 = scmp.ne.s32.totalorder %s175_s27, %s291_s28  ;;  %p297_p12 = scmp.lt.s32.totalorder %s291_s28, %s291_s28 }
  0x23   :  { %217 = vmatpush3.bf16.msra.mxu0 %v244_v2  ;;  %p298_p13 = por %p297_p12, %p296_p11 }
  0x24   :  { %218 = vmatprep.subr.bf16.mxu0 %v323_v0 }
  0x25   :  { %p299_p0 = pnand %p298_p13, %p292_p10 }
  0x27   :  { %219 = vmatpush3.bf16.msra.mxu0 %v245_v3 }
  0x28   :  { %220 = vmatprep.subr.bf16.mxu0 %v323_v0 }
  0x2b   :  { %221 = vmatpush3.bf16.msra.mxu0 %v246_v4 }
  0x2c   :  { %222 = vmatprep.subr.bf16.mxu0 %v323_v0 }
  0x2f   :  { %223 = vmatpush3.bf16.msra.mxu0 %v247_v5 }
  0x30   :  { %224 = vmatprep.subr.bf16.mxu0 %v323_v0 }
  0x33   :  { %225 = vmatpush3.bf16.msra.mxu0 %v248_v6 }
  0x34   :  { %226 = vmatprep.subr.bf16.mxu0 %v323_v0 }
  0x37   :  { %227 = vmatpush3.bf16.msra.mxu0 %v249_v7 }
  0x38   :  { %228 = vmatprep.subr.bf16.mxu0 %v323_v0 }
  0x3b   :  { %229 = vmatpush3.bf16.msra.mxu0 %v250_v8 }
  0x3e   :  { %231 = vmatmul.mubr.bf16.vlgmr.msra.gmra.mxu0 %v46_v11 }
  0xfe   :  { %v152_v12 = vpop.f32.mrf.mxu0 }
  0xff   :  { %v153_v16 = vadd.f32 %v187_v13, %v152_v12 }
 0x100   :  { %v232_v14 = vpop.f32.mrf.mxu0 }
 0x102   :  { %v155_v15 = vpop.f32.mrf.mxu0 }
 0x103   :  { %v156_v17 = vadd.f32 %v187_v13, %v155_v15 }
 0x104   :  { %v233_v18 = vpop.f32.mrf.mxu0 }
 0x105   :  { %v203_v19 = vpack.c.bf16 %v156_v17, %v153_v16 }
 0x107   :  { %204 = vst [vmem:[#allocation7] sm:$0xff] %v203_v19  }
 0x108   :  { %302 = shalt.err (!%p299_p0)
}
 0x109   :  { %180 = dma.vmem_to_hbm [thread:$0]  %s175_s27, 128, %s367_s3, [#allocation4], %s321_s22, %s321_s22, %s322_s23  }
 0x10a   :  { %315 = dma.done.wait [#allocation4], 128  }
 0x10b   :  { %316 = vsyncadd [#allocation4], 4294967168 }
 0x10c   :  { %184 = vsyncpa [#allocation3], 1 }
 0x10d   :  { %185 = vsyncpa [#allocation6], 1 }
 0x10e   :  { %186 = vsyncpa [#allocation4], 1 }

// kernel: tpu_custom_call.1
= control target key start
LH: loop header
LB: loop body
LE: loop exit
PB: predicated region body
PF: predicated region fallthrough
CT: control target
= control target key end

     0   :  { %8 = vsyncpa [#allocation3], 0  ;;  %s364_s0 = inlined_call_operand.hbm [shape: f32[16,128], index: 0, kind: input, shape index: {}]   ;;  %s365_s1 = inlined_call_operand.hbm [shape: bf16[128,128], index: 1, kind: input, shape index: {}]   ;;  %s366_s2 = inlined_call_operand.vmem [shape: f32[1,128], index: 2, kind: input, shape index: {}]   ;;  %s367_s3 = inlined_call_operand.hbm [shape: bf16[16,128], index: 3, kind: output, shape index: {}]  }
   0x1   :  { %9 = vsyncpa [#allocation6], 0 }
   0x2   :  { %10 = vsyncpa [#allocation4], 0  ;;  %s317_s12 = smov [#allocation2]  }
   0x3   :  { %s16_s13 = sshll.u32 %s317_s12, 4  ;;  %s17_s13 = int_to_ptr.vmem [resolvable:$true] %s16_s13 }
   0x4   :  { %s259_s14 = scalar_lea.vmem %s17_s13, 256  ;;  %p264_p1 = scmp.lt.s32.totalorder %s17_s13, %s17_s13 }
   0x5   :  { %p260_p0 = scmp.ne.s32.totalorder %s17_s13, %s259_s14  ;;  %p265_p2 = scmp.lt.s32.totalorder %s259_s14, %s259_s14 }
   0x7   :  { %p266_p3 = por %p265_p2, %p264_p1 }
   0x9   :  { %p267_p4 = pnand %p266_p3, %p260_p0 }
   0xb   :  { %270 = shalt.err (!%p267_p4)
}
   0xc   :  { %s318_s15 = smov 128   ;;  %s319_s16 = smov 8  }
   0xd   :  { %22 = dma.hbm_to_vmem [thread:$0]  %s364_s0, 256, %s17_s13, [#allocation3], %s318_s15, %s318_s15, %s319_s16  }
   0xe   :  { %s320_s19 = smov [#allocation5]  }
   0xf   :  { %s28_s20 = sshll.u32 %s320_s19, 4  ;;  %s29_s20 = int_to_ptr.vmem [resolvable:$true] %s28_s20 }
  0x10   :  { %s279_s21 = scalar_lea.vmem %s29_s20, 1024  ;;  %p284_p6 = scmp.lt.s32.totalorder %s29_s20, %s29_s20 }
  0x11   :  { %p280_p5 = scmp.ne.s32.totalorder %s29_s20, %s279_s21  ;;  %p285_p7 = scmp.lt.s32.totalorder %s279_s21, %s279_s21 }
  0x13   :  { %p286_p8 = por %p285_p7, %p284_p6 }
  0x15   :  { %p287_p9 = pnand %p286_p8, %p280_p5 }
  0x17   :  { %290 = shalt.err (!%p287_p9)
}
  0x18   :  { %s321_s22 = smov 64   ;;  %s322_s23 = smov 4  }
  0x19   :  { %34 = dma.hbm_to_vmem [thread:$0]  %s365_s1, 1024, %s29_s20, [#allocation6], %s321_s22, %s321_s22, %s322_s23  }
  0x1a   :  { %311 = dma.done.wait [#allocation3], 256  }
  0x1b   :  { %312 = vsyncadd [#allocation3], 4294967040 }
  0x1c   :  { %313 = dma.done.wait [#allocation6], 1024  }
  0x1d   :  { %314 = vsyncadd [#allocation6], 4294966272  ;;  %v323_v0 = vmov 0.0   ;;  %vm324_vm0 = vmmov 0   ;;  %v243_v1 = vld [vmem:[#allocation5 + $0x38] sm:$0xff]   ;;  %v244_v2 = vld [vmem:[#allocation5 + $0x30] sm:$0xff]  }
  0x1e   :  { %214 = vmatprep.subr.bf16.mxu0 %v323_v0  ;;  %230 = vmatprep.mubr.msk.bf16.mxu0 %vm324_vm0, %v323_v0  ;;  %v245_v3 = vld [vmem:[#allocation5 + $0x28] sm:$0xff]   ;;  %v246_v4 = vld [vmem:[#allocation5 + $0x20] sm:$0xff]   ;;  %v247_v5 = vld [vmem:[#allocation5 + $0x18] sm:$0xff]   ;;  %s325_s26 = smov [#allocation7]  }
  0x1f   :  { %215 = vmatpush3.bf16.msra.mxu0 %v243_v1  ;;  %v248_v6 = vld [vmem:[#allocation5 + $0x10] sm:$0xff]   ;;  %v249_v7 = vld [vmem:[#allocation5 + $0x8] sm:$0xff]   ;;  %v250_v8 = vld [vmem:[#allocation5] sm:$0xff]   ;;  %s174_s27 = sshll.u32 %s325_s26, 4  ;;  %s175_s27 = int_to_ptr.vmem [resolvable:$true] %s174_s27 }
  0x20   :  { %216 = vmatprep.subr.bf16.mxu0 %v323_v0  ;;  %v44_v9 = vld [vmem:[#allocation2] sm:$0xff]  ;;  %v45_v10 = vld [vmem:[#allocation2 + $0x8] sm:$0xff]  ;;  %s291_s28 = scalar_lea.vmem %s175_s27, 128  ;;  %p296_p11 = scmp.lt.s32.totalorder %s175_s27, %s175_s27 }
  0x21   :  { %v46_v11 = vpack.c.bf16 %v45_v10, %v44_v9  ;;  %v187_v13 = vld [vmem:[%s366_s2] ss:$0 sm:$0xff]  ;;  %p292_p10 = scmp.ne.s32.totalorder %s175_s27, %s291_s28  ;;  %p297_p12 = scmp.lt.s32.totalorder %s291_s28, %s291_s28 }
  0x23   :  { %217 = vmatpush3.bf16.msra.mxu0 %v244_v2  ;;  %p298_p13 = por %p297_p12, %p296_p11 }
  0x24   :  { %218 = vmatprep.subr.bf16.mxu0 %v323_v0 }
  0x25   :  { %p299_p0 = pnand %p298_p13, %p292_p10 }
  0x27   :  { %219 = vmatpush3.bf16.msra.mxu0 %v245_v3 }
  0x28   :  { %220 = vmatprep.subr.bf16.mxu0 %v323_v0 }
  0x2b   :  { %221 = vmatpush3.bf16.msra.mxu0 %v246_v4 }
  0x2c   :  { %222 = vmatprep.subr.bf16.mxu0 %v323_v0 }
  0x2f   :  { %223 = vmatpush3.bf16.msra.mxu0 %v247_v5 }
  0x30   :  { %224 = vmatprep.subr.bf16.mxu0 %v323_v0 }
  0x33   :  { %225 = vmatpush3.bf16.msra.mxu0 %v248_v6 }
  0x34   :  { %226 = vmatprep.subr.bf16.mxu0 %v323_v0 }
  0x37   :  { %227 = vmatpush3.bf16.msra.mxu0 %v249_v7 }
  0x38   :  { %228 = vmatprep.subr.bf16.mxu0 %v323_v0 }
  0x3b   :  { %229 = vmatpush3.bf16.msra.mxu0 %v250_v8 }
  0x3e   :  { %231 = vmatmul.mubr.bf16.vlgmr.msra.gmra.mxu0 %v46_v11 }
  0xfe   :  { %v152_v12 = vpop.f32.mrf.mxu0 }
  0xff   :  { %v153_v16 = vadd.f32 %v187_v13, %v152_v12 }
 0x100   :  { %v232_v14 = vpop.f32.mrf.mxu0 }
 0x102   :  { %v155_v15 = vpop.f32.mrf.mxu0 }
 0x103   :  { %v156_v17 = vadd.f32 %v187_v13, %v155_v15 }
 0x104   :  { %v233_v18 = vpop.f32.mrf.mxu0 }
 0x105   :  { %v203_v19 = vpack.c.bf16 %v156_v17, %v153_v16 }
 0x107   :  { %204 = vst [vmem:[#allocation7] sm:$0xff] %v203_v19  }
 0x108   :  { %302 = shalt.err (!%p299_p0)
}
 0x109   :  { %180 = dma.vmem_to_hbm [thread:$0]  %s175_s27, 128, %s367_s3, [#allocation4], %s321_s22, %s321_s22, %s322_s23  }
 0x10a   :  { %315 = dma.done.wait [#allocation4], 128  }
 0x10b   :  { %316 = vsyncadd [#allocation4], 4294967168 }
 0x10c   :  { %184 = vsyncpa [#allocation3], 1 }
 0x10d   :  { %185 = vsyncpa [#allocation6], 1 }
 0x10e   :  { %186 = vsyncpa [#allocation4], 1 }

</bundles_post_ra>
